<compile_context>
chip_gen: v5e
topology: v5e:2x2
jax: 0.10.0
libtpu: 0.0.40
codegen_flags: <defaults>
</compile_context>

<pallas_src>
import functools

import jax
import jax.numpy as jnp
from jax import lax
from jax.experimental import pallas as pl
from jax.experimental.pallas import tpu as pltpu

LN_EPS = 1e-5          # nn.LayerNorm default eps


def _round_up(a, m):
    return (a + m - 1) // m * m


def _prenormdrop_kernel(x_ref, gamma_ref, beta_ref, wt_ref, b_ref, o_ref, *,
                        d_real, dropout_p, seed, apply_dropout):
    tile_n, d_pad = x_ref.shape

    # ---- LayerNorm over the (real) last dim, stats in f32 ----
    x = x_ref[...].astype(jnp.float32)                     # (TN, Dp)
    inv_d = 1.0 / float(d_real)
    mean = jnp.sum(x, axis=-1, keepdims=True) * inv_d      # pads are zero
    xc = x - mean
    if d_real != d_pad:
        col = lax.broadcasted_iota(jnp.int32, (tile_n, d_pad), 1)
        xc = jnp.where(col < d_real, xc, 0.0)              # mask padded lanes
    var = jnp.sum(xc * xc, axis=-1, keepdims=True) * inv_d
    inv = lax.rsqrt(var + LN_EPS)
    xn = xc * inv * gamma_ref[...] + beta_ref[...]         # (TN, Dp), f32
    # gamma/beta are zero-padded -> xn is exactly 0 in padded lanes.

    # ---- fn: Linear(dim, dim). bf16 MXU operands, f32 accumulation. ----
    y = jnp.dot(xn.astype(jnp.bfloat16), wt_ref[...],
                preferred_element_type=jnp.float32)        # (TN, Dp)
    y = y + b_ref[...]

    # ---- Dropout: counter-based hash PRNG + integer threshold compare ----
    if apply_dropout:
        base = (pl.program_id(0) * tile_n).astype(jnp.uint32)
        row = lax.broadcasted_iota(jnp.uint32, (tile_n, d_pad), 0) + base
        col = lax.broadcasted_iota(jnp.uint32, (tile_n, d_pad), 1)
        ctr = row * jnp.uint32(d_pad) + col                # unique per element
        ctr = ctr ^ jnp.uint32((seed * 0x9E3779B9) & 0xFFFFFFFF)
        # lowbias32-style avalanche hash (pure VPU integer ops)
        h = ctr
        h = h ^ (h >> 16)
        h = h * jnp.uint32(0x7FEB352D)
        h = h ^ (h >> 15)
        h = h * jnp.uint32(0x846CA68B)
        h = h ^ (h >> 16)
        # keep with prob (1 - p): compare top 31 bits against a threshold.
        thr = jnp.int32(int(dropout_p * (1 << 31)))
        keep = (h >> 1).astype(jnp.int32) >= thr
        y = jnp.where(keep, y * (1.0 / (1.0 - dropout_p)), 0.0)

    o_ref[...] = y.astype(o_ref.dtype)


def prenormdrop(x, gamma, beta, w, b, *, dropout_p=0.1, seed=0,
                training=True, tile_n=256):
    """x: (B, S, D). gamma/beta/b: (D,). w: (D_out, D_in) like nn.Linear."""
    B, S, D = x.shape
    N = B * S

    # Padding: rows up to the tile, lanes up to a multiple of 128.
    d_pad = _round_up(D, 128)
    tile_n = min(tile_n, _round_up(N, 8))
    n_pad = _round_up(N, tile_n)

    x2 = x.reshape(N, D)
    if (n_pad, d_pad) != (N, D):
        x2 = jnp.pad(x2, ((0, n_pad - N), (0, d_pad - D)))

    def _pad_row(v):
        v = v.reshape(1, D).astype(jnp.float32)
        if d_pad != D:
            v = jnp.pad(v, ((0, 0), (0, d_pad - D)))
        return v

    gamma2 = _pad_row(gamma)
    beta2 = _pad_row(beta)
    b2 = _pad_row(b)

    wt = w.T.astype(jnp.bfloat16)                           # (D_in, D_out)
    if d_pad != D:
        wt = jnp.pad(wt, ((0, d_pad - D), (0, d_pad - D)))

    apply_dropout = bool(training) and float(dropout_p) > 0.0
    kernel = functools.partial(
        _prenormdrop_kernel,
        d_real=int(D),
        dropout_p=float(dropout_p),
        seed=int(seed),
        apply_dropout=apply_dropout,
    )

    # VMEM budget: double-buffered x/out tiles + bf16 weight + params.
    itemsize = jnp.dtype(x.dtype).itemsize
    est = 2 * (2 * tile_n * d_pad * itemsize          # x + out blocks
               + d_pad * d_pad * 2                    # bf16 W^T
               + 3 * d_pad * 4)                       # gamma/beta/bias
    vmem_limit = max(32 * 1024 * 1024, int(1.5 * est) + (4 << 20))

    cost = pl.CostEstimate(
        flops=2 * N * D * D + 10 * N * D,
        transcendentals=N,
        bytes_accessed=2 * N * D * itemsize + D * D * 2 + 3 * D * 4,
    )

    out = pl.pallas_call(
        kernel,
        out_shape=jax.ShapeDtypeStruct((n_pad, d_pad), x.dtype),
        grid_spec=pltpu.PrefetchScalarGridSpec(
            num_scalar_prefetch=0,
            grid=(n_pad // tile_n,),
            in_specs=[
                pl.BlockSpec((tile_n, d_pad), lambda i: (i, 0)),   # x rows
                pl.BlockSpec((1, d_pad), lambda i: (0, 0)),        # gamma
                pl.BlockSpec((1, d_pad), lambda i: (0, 0)),        # beta
                pl.BlockSpec((d_pad, d_pad), lambda i: (0, 0)),    # W^T (bf16)
                pl.BlockSpec((1, d_pad), lambda i: (0, 0)),        # bias
            ],
            out_specs=pl.BlockSpec((tile_n, d_pad), lambda i: (i, 0)),
        ),
        compiler_params=pltpu.CompilerParams(
            dimension_semantics=("parallel",),      # row tiles are independent
            vmem_limit_bytes=vmem_limit,
        ),
        cost_estimate=cost,
    )(x2, gamma2, beta2, wt, b2)

    return out[:N, :D].reshape(B, S, D)


if __name__ == "__main__":
    # Small shapes consistent with the module: (batch, seq, dim)
    B, S, D = 2, 8, 32
    key = jax.random.PRNGKey(0)
    kx, kw, kb = jax.random.split(key, 3)

    x = jax.random.normal(kx, (B, S, D), dtype=jnp.float32)

    # Deterministic parameters (LayerNorm default: gamma=1, beta=0).
    gamma = jnp.ones((D,), jnp.float32)
    beta = jnp.zeros((D,), jnp.float32)
    w = jax.random.normal(kw, (D, D), dtype=jnp.float32) * (1.0 / jnp.sqrt(D))
    b = jax.random.normal(kb, (D,), dtype=jnp.float32) * 0.01

    # Eval-mode run (dropout disabled) checked against a pure-JAX reference.
    out_eval = prenormdrop(x, gamma, beta, w, b, dropout_p=0.1, training=False)
    jax.block_until_ready(out_eval)

    mu = jnp.mean(x, axis=-1, keepdims=True)
    var = jnp.mean((x - mu) ** 2, axis=-1, keepdims=True)
    xn_ref = (x - mu) / jnp.sqrt(var + LN_EPS) * gamma + beta
    ref = xn_ref @ w.T + b

    assert out_eval.shape == (B, S, D)
    assert jnp.allclose(out_eval, ref, atol=1e-1, rtol=1e-1), "eval mismatch"

    # Training-mode run (dropout active, deterministic in-kernel hash PRNG).
    out_train = prenormdrop(x, gamma, beta, w, b, dropout_p=0.1,
                            training=True, seed=1234)
    jax.block_until_ready(out_train)
    assert out_train.shape == (B, S, D)
    assert bool(jnp.all(jnp.isfinite(out_train)))

    print("KERNEL_OK")
</pallas_src>

<mosaic_0001>
module attributes {stable_mosaic.version = 11 : i64} {
  func.func @_prenormdrop_kernel(%arg0: i32, %arg1: memref<16x128xf32, #tpu.memory_space<vmem>>, %arg2: memref<1x128xf32, #tpu.memory_space<vmem>>, %arg3: memref<1x128xf32, #tpu.memory_space<vmem>>, %arg4: memref<128x128xbf16, #tpu.memory_space<vmem>>, %arg5: memref<1x128xf32, #tpu.memory_space<vmem>>, %arg6: memref<16x128xf32, #tpu.memory_space<vmem>>) attributes {dimension_semantics = [#tpu.dimension_semantics<parallel>], iteration_bounds = array<i64: 1>, scalar_prefetch = 0 : i64, scratch_operands = 0 : i64, tpu.core_type = #tpu.core_type<tc>, window_params = [{transform_indices = @transform_0, window_bounds = array<i64: 16, 128>}, {pipeline_mode = #tpu.pipeline_mode<synchronous>, transform_indices = @transform_1, window_bounds = array<i64: 1, 128>}, {pipeline_mode = #tpu.pipeline_mode<synchronous>, transform_indices = @transform_2, window_bounds = array<i64: 1, 128>}, {pipeline_mode = #tpu.pipeline_mode<synchronous>, transform_indices = @transform_3, window_bounds = array<i64: 128, 128>}, {pipeline_mode = #tpu.pipeline_mode<synchronous>, transform_indices = @transform_4, window_bounds = array<i64: 1, 128>}, {transform_indices = @transform_5, window_bounds = array<i64: 16, 128>}]} {
    %c0 = arith.constant 0 : index
    %c0_0 = arith.constant 0 : index
    %0 = vector.load %arg1[%c0, %c0_0] : memref<16x128xf32, #tpu.memory_space<vmem>>, vector<16x128xf32>
    %cst = arith.constant dense<0.000000e+00> : vector<16xf32>
    %1 = vector.multi_reduction <add>, %0, %cst [1] : vector<16x128xf32> to vector<16xf32>
    %2 = vector.shape_cast %1 : vector<16xf32> to vector<16x1xf32>
    %cst_1 = arith.constant 3.125000e-02 : f32
    %3 = vector.broadcast %cst_1 : f32 to vector<16x1xf32>
    %4 = arith.mulf %2, %3 : vector<16x1xf32>
    %5 = vector.broadcast %4 : vector<16x1xf32> to vector<16x128xf32>
    %6 = arith.subf %0, %5 : vector<16x128xf32>
    %7 = tpu.iota {dimensions = array<i32: 1>} : vector<16x128xi32>
    %c32_i32 = arith.constant 32 : i32
    %8 = vector.broadcast %c32_i32 : i32 to vector<16x128xi32>
    %9 = arith.cmpi slt, %7, %8 : vector<16x128xi32>
    %cst_2 = arith.constant 0.000000e+00 : f32
    %10 = vector.broadcast %cst_2 : f32 to vector<16x128xf32>
    %11 = arith.select %9, %6, %10 : vector<16x128xi1>, vector<16x128xf32>
    %12 = arith.mulf %11, %11 : vector<16x128xf32>
    %cst_3 = arith.constant dense<0.000000e+00> : vector<16xf32>
    %13 = vector.multi_reduction <add>, %12, %cst_3 [1] : vector<16x128xf32> to vector<16xf32>
    %14 = vector.shape_cast %13 : vector<16xf32> to vector<16x1xf32>
    %cst_4 = arith.constant 3.125000e-02 : f32
    %15 = vector.broadcast %cst_4 : f32 to vector<16x1xf32>
    %16 = arith.mulf %14, %15 : vector<16x1xf32>
    %cst_5 = arith.constant 9.99999974E-6 : f32
    %17 = vector.broadcast %cst_5 : f32 to vector<16x1xf32>
    %18 = arith.addf %16, %17 : vector<16x1xf32>
    %19 = math.rsqrt %18 : vector<16x1xf32>
    %20 = vector.broadcast %19 : vector<16x1xf32> to vector<16x128xf32>
    %21 = arith.mulf %11, %20 : vector<16x128xf32>
    %c0_6 = arith.constant 0 : index
    %c0_7 = arith.constant 0 : index
    %22 = vector.load %arg2[%c0_6, %c0_7] : memref<1x128xf32, #tpu.memory_space<vmem>>, vector<1x128xf32>
    %23 = vector.broadcast %22 : vector<1x128xf32> to vector<16x128xf32>
    %24 = arith.mulf %21, %23 : vector<16x128xf32>
    %c0_8 = arith.constant 0 : index
    %c0_9 = arith.constant 0 : index
    %25 = vector.load %arg3[%c0_8, %c0_9] : memref<1x128xf32, #tpu.memory_space<vmem>>, vector<1x128xf32>
    %26 = vector.broadcast %25 : vector<1x128xf32> to vector<16x128xf32>
    %27 = arith.addf %24, %26 : vector<16x128xf32>
    %28 = arith.truncf %27 : vector<16x128xf32> to vector<16x128xbf16>
    %c0_10 = arith.constant 0 : index
    %c0_11 = arith.constant 0 : index
    %29 = vector.load %arg4[%c0_10, %c0_11] : memref<128x128xbf16, #tpu.memory_space<vmem>>, vector<128x128xbf16>
    %cst_12 = arith.constant dense<0.000000e+00> : vector<16x128xf32>
    %30 = tpu.matmul %28, %29, %cst_12 {dimension_numbers = #tpu.dot_dimension_numbers<[1], [0], [0], [1], [0, 0, 1, 1], [], []>} : vector<16x128xbf16>, vector<128x128xbf16>, vector<16x128xf32> -> vector<16x128xf32>
    %c0_13 = arith.constant 0 : index
    %c0_14 = arith.constant 0 : index
    %31 = vector.load %arg5[%c0_13, %c0_14] : memref<1x128xf32, #tpu.memory_space<vmem>>, vector<1x128xf32>
    %32 = vector.broadcast %31 : vector<1x128xf32> to vector<16x128xf32>
    %33 = arith.addf %30, %32 : vector<16x128xf32>
    %c0_15 = arith.constant 0 : index
    %c0_16 = arith.constant 0 : index
    %34 = vector.load %arg6[%c0_15, %c0_16] : memref<16x128xf32, #tpu.memory_space<vmem>>, vector<16x128xf32>
    tpu.vector_store %arg6[%c0_15, %c0_16], %33 {strides = array<i32>} : memref<16x128xf32, #tpu.memory_space<vmem>>, vector<16x128xf32>,
    return
  }
  func.func @transform_0(%arg0: i32) -> (i32, i32) {
    %c0_i32 = arith.constant 0 : i32
    %c0_i32_0 = arith.constant 0 : i32
    return %arg0, %c0_i32 : i32, i32
  }
  func.func @transform_1(%arg0: i32) -> (i32, i32) {
    %c0_i32 = arith.constant 0 : i32
    %c0_i32_0 = arith.constant 0 : i32
    %c0_i32_1 = arith.constant 0 : i32
    return %c0_i32, %c0_i32_0 : i32, i32
  }
  func.func @transform_2(%arg0: i32) -> (i32, i32) {
    %c0_i32 = arith.constant 0 : i32
    %c0_i32_0 = arith.constant 0 : i32
    %c0_i32_1 = arith.constant 0 : i32
    return %c0_i32, %c0_i32_0 : i32, i32
  }
  func.func @transform_3(%arg0: i32) -> (i32, i32) {
    %c0_i32 = arith.constant 0 : i32
    %c0_i32_0 = arith.constant 0 : i32
    %c0_i32_1 = arith.constant 0 : i32
    return %c0_i32, %c0_i32_0 : i32, i32
  }
  func.func @transform_4(%arg0: i32) -> (i32, i32) {
    %c0_i32 = arith.constant 0 : i32
    %c0_i32_0 = arith.constant 0 : i32
    %c0_i32_1 = arith.constant 0 : i32
    return %c0_i32, %c0_i32_0 : i32, i32
  }
  func.func @transform_5(%arg0: i32) -> (i32, i32) {
    %c0_i32 = arith.constant 0 : i32
    %c0_i32_0 = arith.constant 0 : i32
    return %arg0, %c0_i32 : i32, i32
  }
}

</mosaic_0001>

<bundles_post_ra>
// kernel: tpu_custom_call.1
= control target key start
LH: loop header
LB: loop body
LE: loop exit
PB: predicated region body
PF: predicated region fallthrough
CT: control target
= control target key end

     0   :  { %10 = vsyncpa [#allocation3], 0  ;;  %s449_s0 = inlined_call_operand.hbm [shape: f32[16,128], index: 0, kind: input, shape index: {}]   ;;  %s450_s1 = inlined_call_operand.hbm [shape: f32[1,128], index: 1, kind: input, shape index: {}]   ;;  %s451_s2 = inlined_call_operand.vmem [shape: f32[1,128], index: 2, kind: input, shape index: {}]   ;;  %s452_s3 = inlined_call_operand.hbm [shape: bf16[128,128], index: 3, kind: input, shape index: {}]   ;;  %s453_s4 = inlined_call_operand.vmem [shape: f32[1,128], index: 4, kind: input, shape index: {}]   ;;  %s454_s5 = inlined_call_operand.hbm [shape: f32[16,128], index: 5, kind: output, shape index: {}]  }
   0x1   :  { %11 = vsyncpa [#allocation6], 0  ;;  %s31_s20 = sshll.u32 %s450_s1, 4  ;;  %s32_s20 = int_to_ptr.hbm [resolvable:$true] %s31_s20 }
   0x2   :  { %12 = vsyncpa [#allocation4], 0  ;;  %s387_s21 = smov [#allocation5]   ;;  %s17_s25 = sshll.u32 %s449_s0, 4  ;;  %s18_s25 = int_to_ptr.hbm [resolvable:$true] %s17_s25 }
   0x3   :  { %s33_s22 = sshll.u32 %s387_s21, 4  ;;  %s388_s26 = smov [#allocation2]   ;;  %s34_s22 = int_to_ptr.vmem [resolvable:$true] %s33_s22 }
   0x4   :  { %36 = dma.hbm_to_vmem [thread:$0]  %s32_s20, 16, %s34_s22, [#allocation6]  }
   0x5   :  { %s19_s27 = sshll.u32 %s388_s26, 4  ;;  %s389_s28 = smov 128   ;;  %s20_s27 = int_to_ptr.vmem [resolvable:$true] %s19_s27 }
   0x6   :  { %s390_s29 = smov 8   ;;  %s43_s6 = sshll.u32 %s452_s3, 4  ;;  %s44_s6 = int_to_ptr.hbm [resolvable:$true] %s43_s6 }
   0x7   :  { %25 = dma.hbm_to_vmem [thread:$0]  %s18_s25, 256, %s20_s27, [#allocation3], %s389_s28, %s389_s28, %s390_s29  }
   0x8   :  { %s391_s7 = smov [#allocation7]   ;;  %s392_s0 = smov 64  }
   0x9   :  { %s45_s8 = sshll.u32 %s391_s7, 4  ;;  %s393_s9 = smov 4   ;;  %s46_s8 = int_to_ptr.vmem [resolvable:$true] %s45_s8 }
   0xa   :  { %51 = dma.hbm_to_vmem [thread:$0]  %s44_s6, 1024, %s46_s8, [#allocation6], %s392_s0, %s392_s0, %s393_s9  }
   0xb   :  { %381 = dma.done.wait [#allocation3], 256  }
   0xc   :  { %382 = vsyncadd [#allocation3], 4294967040 }
   0xd   :  { %383 = dma.done.wait [#allocation6], 1040  }
   0xe   :  { %384 = vsyncadd [#allocation6], 4294966256  ;;  %v66_v0 = vld [vmem:[#allocation2] sm:$0xff]  ;;  %v67_v1 = vld [vmem:[#allocation2 + $0x8] sm:$0xff]  ;;  %v76_v2 = vlaneseq  ;;  %s394_s13 = smov [#allocation8]   ;;  %s216_s17 = sshll.u32 %s454_s5, 4  ;;  %s217_s17 = int_to_ptr.hbm [resolvable:$true] %s216_s17 }
   0xf   :  { %68 = vadd.xlane.f32.xlu0 %v66_v0  ;;  %v269_v14 = vld [vmem:[#allocation7 + $0x38] sm:$0xff]  ;;  %v268_v15 = vld [vmem:[#allocation7 + $0x30] sm:$0xff]  ;;  %v267_v16 = vld [vmem:[#allocation7 + $0x28] sm:$0xff]  ;;  %s214_s14 = sshll.u32 %s394_s13, 4  ;;  %s215_s14 = int_to_ptr.vmem [resolvable:$true] %s214_s14 }
  0x10   :  { %v77_v3 = vand.u32 127, %v76_v2  ;;  %194 = vmatpush.bf16.msra.mxu0 %v269_v14  ;;  %v266_v17 = vld [vmem:[#allocation7 + $0x20] sm:$0xff]  ;;  %v265_v18 = vld [vmem:[#allocation7 + $0x18] sm:$0xff]  ;;  %v264_v19 = vld [vmem:[#allocation7 + $0x10] sm:$0xff] }
  0x11   :  { %v263_v20 = vld [vmem:[#allocation7 + $0x8] sm:$0xff]  ;;  %v262_v22 = vld [vmem:[#allocation7] sm:$0xff]  ;;  %v278_v41 = vld [vmem:[#allocation5] ss:$0 sm:$0xff] }
  0x12   :  { %vm78_vm0 = vcmp.lt.s32.totalorder %v77_v3, 32  ;;  %v279_v46 = vld [vmem:[%s451_s2] ss:$0 sm:$0xff] }
  0x13   :  { %v280_v51 = vld [vmem:[%s453_s4] ss:$0 sm:$0xff] }
  0x14   :  { %195 = vmatpush.bf16.msra.mxu0 %v268_v15 }
  0x17   :  { %70 = vadd.xlane.f32.xlu0 %v67_v1 }
  0x18   :  { %196 = vmatpush.bf16.msra.mxu0 %v267_v16 }
  0x1c   :  { %197 = vmatpush.bf16.msra.mxu0 %v266_v17 }
  0x20   :  { %198 = vmatpush.bf16.msra.mxu0 %v265_v18 }
  0x24   :  { %199 = vmatpush.bf16.msra.mxu0 %v264_v19 }
  0x28   :  { %200 = vmatpush.bf16.msra.mxu0 %v263_v20 }
  0x2c   :  { %201 = vmatpush.bf16.msra.mxu0 %v262_v22 }
  0x82   :  { %v69_v4 = vpop.xlane.xlu0 %68 }
  0x83   :  { %v72_v5 = vmul.f32 0.03125, %v69_v4 }
  0x85   :  { %v74_v6 = vsub.f32 %v66_v0, %v72_v5 }
  0x87   :  { %v79_v7 = vsel %vm78_vm0, %v74_v6, 0.0 }
  0x88   :  { %v81_v8 = vmul.f32 %v79_v7, %v79_v7 }
  0x8a   :  { %83 = vadd.xlane.f32.xlu1 %v81_v8  ;;  %v71_v9 = vpop.xlane.xlu0 %70 }
  0x8b   :  { %v73_v10 = vmul.f32 0.03125, %v71_v9 }
  0x8d   :  { %v75_v11 = vsub.f32 %v67_v1, %v73_v10 }
  0x8f   :  { %v80_v12 = vsel %vm78_vm0, %v75_v11, 0.0 }
  0x90   :  { %v82_v13 = vmul.f32 %v80_v12, %v80_v12 }
  0x92   :  { %85 = vadd.xlane.f32.xlu1 %v82_v13 }
  0xfd   :  { %v84_v21 = vpop.xlane.xlu1 %83 }
  0xfe   :  { %v87_v23 = vmul.f32 0.03125, %v84_v21 }
 0x100   :  { %v89_v24 = vadd.f32 1e-05, %v87_v23 }
 0x102   :  { %281 = vrsqrt.f32 %v89_v24  ;;  %vm97_vm2 = vweird.f32 %v89_v24 }
 0x105   :  { %v86_v25 = vpop.xlane.xlu1 %85 }
 0x106   :  { %v88_v26 = vmul.f32 0.03125, %v86_v25 }
 0x108   :  { %v282_v27 = vpop.eup %281  ;;  %v90_v28 = vadd.f32 1e-05, %v88_v26 }
 0x109   :  { %v92_v29 = vmul.f32 %v282_v27, %v89_v24  ;;  %vm98_vm1 = vweird.f32 %v282_v27 }
 0x10a   :  { %283 = vrsqrt.f32 %v90_v28  ;;  %vm99_vm3 = vmor %vm97_vm2, %vm98_vm1  ;;  %vm107_vm5 = vweird.f32 %v90_v28 }
 0x10b   :  { %v93_v30 = vmul.f32 %v282_v27, %v92_v29 }
 0x10d   :  { %v94_v31 = vmul.f32 0.5, %v93_v30 }
 0x10f   :  { %v95_v32 = vsub.f32 1.5, %v94_v31 }
 0x110   :  { %v284_v33 = vpop.eup %283 }
 0x111   :  { %v96_v34 = vmul.f32 %v282_v27, %v95_v32  ;;  %v102_v35 = vmul.f32 %v284_v33, %v90_v28  ;;  %vm108_vm4 = vweird.f32 %v284_v33 }
 0x112   :  { %vm109_vm6 = vmor %vm107_vm5, %vm108_vm4 }
 0x113   :  { %v103_v36 = vmul.f32 %v284_v33, %v102_v35  ;;  %v100_v38 = vsel %vm99_vm3, %v282_v27, %v96_v34 }
 0x114   :  { %v111_v40 = vmul.f32 %v100_v38, %v79_v7 }
 0x115   :  { %v104_v37 = vmul.f32 0.5, %v103_v36 }
 0x116   :  { %v117_v45 = vmul.f32 %v278_v41, %v111_v40 }
 0x117   :  { %v105_v39 = vsub.f32 1.5, %v104_v37 }
 0x118   :  { %v123_v48 = vadd.f32 %v279_v46, %v117_v45 }
 0x119   :  { %v106_v42 = vmul.f32 %v284_v33, %v105_v39 }
 0x11b   :  { %v110_v43 = vsel %vm109_vm6, %v284_v33, %v106_v42 }
 0x11c   :  { %v112_v44 = vmul.f32 %v110_v43, %v80_v12 }
 0x11e   :  { %v118_v47 = vmul.f32 %v278_v41, %v112_v44 }
 0x120   :  { %v124_v49 = vadd.f32 %v279_v46, %v118_v47 }
 0x122   :  { %v125_v50 = vpack.c.bf16 %v124_v49, %v123_v48 }
 0x124   :  { %202 = vmatmul.bf16.vlgmr.msra.gmra.mxu0 %v125_v50 }
 0x1a1   :  { %v203_v52 = vpop.f32.mrf.mxu0 }
 0x1a2   :  { %v204_v53 = vadd.f32 %v280_v51, %v203_v52 }
 0x1a4   :  { %208 = vst [vmem:[#allocation8] sm:$0xff] %v204_v53 }
 0x1a9   :  { %v205_v54 = vpop.f32.mrf.mxu0 }
 0x1aa   :  { %v206_v55 = vadd.f32 %v280_v51, %v205_v54 }
 0x1ac   :  { %209 = vst [vmem:[#allocation8 + $0x8] sm:$0xff] %v206_v55 }
 0x1ad   :  { %222 = dma.vmem_to_hbm [thread:$0]  %s215_s14, 256, %s217_s17, [#allocation4], %s389_s28, %s389_s28, %s390_s29  }
 0x1ae   :  { %385 = dma.done.wait [#allocation4], 256  }
 0x1af   :  { %386 = vsyncadd [#allocation4], 4294967040 }
 0x1b0   :  { %227 = vsyncpa [#allocation3], 1 }
 0x1b1   :  { %228 = vsyncpa [#allocation6], 1 }
 0x1b2   :  { %229 = vsyncpa [#allocation4], 1 }

</bundles_post_ra>
